<compile_context>
chip_gen: v6e
topology: v6e:2x2x1
jax: 0.10.0
libtpu: 0.0.40
codegen_flags: <defaults>
</compile_context>

<pallas_src>
import functools

import jax
import jax.numpy as jnp
from jax.experimental import pallas as pl
from jax.experimental.pallas import tpu as pltpu


def _causal_conv_kernel(x_ref, w_ref, b_ref, o_ref, xcol_ref, *scratch,
                        K, B_blk, L_tile, C_in, multi_l):
    # x_ref    : (B_blk, C_in, L_tile)      un-padded input tile
    # w_ref    : (C_out, K*C_in)            lane-dense, k-major flattened weight
    # b_ref    : (C_out, 1)                 bias (f32)
    # o_ref    : (B_blk, C_out, L_tile)
    # xcol_ref : (K*C_in, B_blk*L_tile)     persistent im2col scratch (x dtype)
    # scratch[0] (only if K > 1): (B_blk, C_in, K-1) halo carried across L tiles
    halo_ref = scratch[0] if K > 1 else None
    l = pl.program_id(1)

    if K > 1:
        @pl.when(l == 0)
        def _():
            halo_ref[...] = jnp.zeros_like(halo_ref)

    # ---- im2col written directly into the persistent scratch (no concat temps)
    for b in range(B_blk):
        x_b = x_ref[b]                                   # (C_in, L_tile)
        col0 = b * L_tile
        for kk in range(K):
            row0 = kk * C_in
            h = min(K - 1 - kk, L_tile)                  # halo columns for this tap
            if h > 0:
                xcol_ref[row0:row0 + C_in, col0:col0 + h] = halo_ref[b, :, kk:kk + h]
            if h < L_tile:
                xcol_ref[row0:row0 + C_in, col0 + h:col0 + L_tile] = x_b[:, :L_tile - h]

    # ---- one fused MXU GEMM for the whole batch block, bias added once -------
    acc = jnp.dot(w_ref[...], xcol_ref[...],
                  preferred_element_type=jnp.float32)    # (C_out, B_blk*L_tile)
    acc = acc + b_ref[...]                               # (C_out, 1) broadcast

    for b in range(B_blk):
        o_ref[b] = acc[:, b * L_tile:(b + 1) * L_tile].astype(o_ref.dtype)

    # ---- carry the last K-1 input columns into the next L tile's halo --------
    # NOTE: the `l + 1 < num_programs(1)` gate is load-bearing: it keeps the
    # padded-garbage tail of a partial last L tile out of the halo.
    if K > 1 and multi_l:
        @pl.when(l + 1 < pl.num_programs(1))
        def _():
            halo_ref[...] = x_ref[:, :, L_tile - (K - 1):]


def causal_conv1d(x, weight, bias=None):
    """Causal 1-D convolution.

    x:      (N, C_in, L)
    weight: (C_out, C_in, K)
    bias:   (C_out,) or None
    returns (N, C_out, L)
    """
    n, c_in, length = x.shape
    c_out, c_in_w, k = weight.shape
    assert c_in == c_in_w

    # Lane-dense, k-major flattened weight: w2[o, kk*C_in + c] = weight[o, c, kk]
    # jnp.dot(w2, xcol) is the canonical Pallas MXU orientation (lhs contraction
    # on the lane axis), so no per-step weight relayout is expected.
    w2 = jnp.transpose(weight, (0, 2, 1)).reshape(c_out, k * c_in).astype(x.dtype)
    if bias is None:
        bias2d = jnp.zeros((c_out, 1), dtype=jnp.float32)
    else:
        bias2d = bias.reshape(c_out, 1).astype(jnp.float32)

    itemsize = jnp.dtype(x.dtype).itemsize

    # ---- VMEM capacity (portable: 128 MiB v5e/v6e, 64 MiB v7x) ---------------
    try:
        vmem_cap = int(pltpu.get_tpu_info().vmem_capacity_bytes)
    except Exception:
        vmem_cap = 64 * 1024 * 1024

    # ---- L tiling: lane-dense tiles (multiple of 128) or the whole sequence --
    if length <= 2048:
        l_tile = length
    elif (k - 1) <= 2048:
        l_tile = 2048
    else:
        # TODO(synk): K-1 > 2048 with long L needs a banded/FFT algorithm; this
        # single-tile fallback may exceed VMEM for very long sequences.
        l_tile = length
    num_l = pl.cdiv(length, l_tile)
    multi_l = num_l > 1

    # ---- batch blocking: byte-budgeted, >=2 parallel grid blocks when N >= 2 -
    def step_bytes(bb):
        x_t = bb * c_in * l_tile * itemsize
        o_t = bb * c_out * l_tile * itemsize
        xcol = k * c_in * bb * l_tile * itemsize           # persistent im2col scratch
        acc = c_out * bb * l_tile * 4                      # f32 GEMM result
        halo = bb * c_in * max(k - 1, 1) * itemsize
        w_b = c_out * k * c_in * itemsize
        return 2 * (x_t + o_t) + xcol + acc + halo + 2 * w_b + c_out * 4

    vmem_budget = int(0.60 * vmem_cap)
    target_move = 8 * 1024 * 1024                          # x+out bytes per grid step
    b_blk = 1
    for bb in range(1, n + 1):
        if step_bytes(bb) > vmem_budget:
            break
        b_blk = bb
        if bb * (c_in + c_out) * l_tile * itemsize >= target_move:
            break
    if n >= 2:
        b_blk = min(b_blk, -(-n // 2))                     # keep >=2 batch blocks (megacore)
    num_b = pl.cdiv(n, b_blk)

    est = step_bytes(b_blk)
    vmem_limit = min(max(2 * est, 32 * 1024 * 1024), int(0.68 * vmem_cap))
    vmem_limit = int(min(max(vmem_limit, est + (8 << 20)), int(0.90 * vmem_cap)))

    kernel = functools.partial(_causal_conv_kernel, K=k, B_blk=b_blk,
                               L_tile=l_tile, C_in=c_in, multi_l=multi_l)

    scratch_shapes = [pltpu.VMEM((k * c_in, b_blk * l_tile), x.dtype)]
    if k > 1:
        scratch_shapes.append(pltpu.VMEM((b_blk, c_in, k - 1), x.dtype))

    cost = pl.CostEstimate(
        flops=2 * n * length * c_out * c_in * k,
        transcendentals=0,
        bytes_accessed=((n * c_in * length + n * c_out * length
                         + c_out * c_in * k) * itemsize + c_out * 4),
    )

    return pl.pallas_call(
        kernel,
        out_shape=jax.ShapeDtypeStruct((n, c_out, length), x.dtype),
        grid=(num_b, num_l),
        in_specs=[
            pl.BlockSpec((b_blk, c_in, l_tile), lambda b, l: (b, 0, l)),
            pl.BlockSpec((c_out, k * c_in), lambda b, l: (0, 0)),
            pl.BlockSpec((c_out, 1), lambda b, l: (0, 0)),
        ],
        out_specs=pl.BlockSpec((b_blk, c_out, l_tile), lambda b, l: (b, 0, l)),
        scratch_shapes=scratch_shapes,
        compiler_params=pltpu.CompilerParams(
            dimension_semantics=("parallel", "arbitrary"),
            vmem_limit_bytes=vmem_limit,
        ),
        cost_estimate=cost,
    )(x, w2, bias2d)


def _reference(x, weight, bias):
    """Pure-JAX reference of ckconv causal_conv for verification."""
    k = weight.shape[-1]
    x_pad = jnp.pad(x, ((0, 0), (0, 0), (k - 1, 0)))
    out = jax.lax.conv_general_dilated(
        x_pad, weight,
        window_strides=(1,), padding="VALID",
        dimension_numbers=("NCH", "OIH", "NCH"),
    )
    return out + bias[None, :, None]


if __name__ == "__main__":
    # Small, deterministic example consistent with CausalConv1d(__init__):
    # in_channels=4, out_channels=6, kernel_size=3, bias=True.
    N, C_IN, C_OUT, K, L = 2, 4, 6, 3, 16

    key = jax.random.PRNGKey(0)
    kx, kw, kb = jax.random.split(key, 3)
    x = jax.random.normal(kx, (N, C_IN, L), dtype=jnp.float32)
    weight = jax.random.normal(kw, (C_OUT, C_IN, K), dtype=jnp.float32) * 0.1
    bias = jax.random.normal(kb, (C_OUT,), dtype=jnp.float32) * 0.1

    out = causal_conv1d(x, weight, bias)
    out = jax.block_until_ready(out)

    ref = jax.block_until_ready(_reference(x, weight, bias))
    assert out.shape == (N, C_OUT, L)
    assert jnp.allclose(out, ref, atol=1e-4, rtol=1e-4), "mismatch vs reference"

    print("KERNEL_OK")
</pallas_src>

<mosaic_0001>
module attributes {stable_mosaic.version = 11 : i64} {
  func.func @_causal_conv_kernel(%arg0: i32, %arg1: i32, %arg2: memref<1x4x16xf32, #tpu.memory_space<vmem>>, %arg3: memref<6x12xf32, #tpu.memory_space<vmem>>, %arg4: memref<6x1xf32, #tpu.memory_space<vmem>>, %arg5: memref<1x6x16xf32, #tpu.memory_space<vmem>>, %arg6: memref<12x16xf32, #tpu.memory_space<vmem>>, %arg7: memref<1x4x2xf32, #tpu.memory_space<vmem>>) attributes {dimension_semantics = [#tpu.dimension_semantics<parallel>, #tpu.dimension_semantics<arbitrary>], iteration_bounds = array<i64: 2, 1>, scalar_prefetch = 0 : i64, scratch_operands = 2 : i64, tpu.core_type = #tpu.core_type<tc>, window_params = [{transform_indices = @transform_0, window_bounds = array<i64: 1, 4, 16>}, {pipeline_mode = #tpu.pipeline_mode<synchronous>, transform_indices = @transform_1, window_bounds = array<i64: 6, 12>}, {pipeline_mode = #tpu.pipeline_mode<synchronous>, transform_indices = @transform_2, window_bounds = array<i64: 6, 1>}, {transform_indices = @transform_3, window_bounds = array<i64: 1, 6, 16>}]} {
    %c0_i32 = arith.constant 0 : i32
    %0 = arith.cmpi eq, %arg1, %c0_i32 : i32
    %1 = arith.extui %0 : i1 to i32
    %c0_i32_0 = arith.constant 0 : i32
    %2 = arith.cmpi ne, %1, %c0_i32_0 : i32
    scf.if %2 {
      %cst_24 = arith.constant 0.000000e+00 : f32
      %25 = vector.broadcast %cst_24 : f32 to vector<1x4x2xf32>
      %c0_25 = arith.constant 0 : index
      %c0_26 = arith.constant 0 : index
      %c0_27 = arith.constant 0 : index
      %26 = vector.load %arg7[%c0_25, %c0_26, %c0_27] : memref<1x4x2xf32, #tpu.memory_space<vmem>>, vector<1x4x2xf32>
      tpu.vector_store %arg7[%c0_25, %c0_26, %c0_27], %25 {strides = array<i32>} : memref<1x4x2xf32, #tpu.memory_space<vmem>>, vector<1x4x2xf32>,
    } else {
    }
    %c0 = arith.constant 0 : index
    %c0_1 = arith.constant 0 : index
    %c0_2 = arith.constant 0 : index
    %3 = vector.load %arg2[%c0, %c0_1, %c0_2] : memref<1x4x16xf32, #tpu.memory_space<vmem>>, vector<1x4x16xf32>
    %4 = vector.shape_cast %3 : vector<1x4x16xf32> to vector<4x16xf32>
    %c0_3 = arith.constant 0 : index
    %c0_4 = arith.constant 0 : index
    %c0_5 = arith.constant 0 : index
    %5 = vector.load %arg7[%c0_3, %c0_4, %c0_5] : memref<1x4x2xf32, #tpu.memory_space<vmem>>, vector<1x4x2xf32>
    %6 = vector.shape_cast %5 : vector<1x4x2xf32> to vector<4x2xf32>
    %c0_6 = arith.constant 0 : index
    %c0_7 = arith.constant 0 : index
    %7 = vector.load %arg6[%c0_6, %c0_7] : memref<12x16xf32, #tpu.memory_space<vmem>>, vector<4x2xf32>
    tpu.vector_store %arg6[%c0_6, %c0_7], %6 {strides = array<i32>} : memref<12x16xf32, #tpu.memory_space<vmem>>, vector<4x2xf32>,
    %8 = vector.extract_strided_slice %4 {offsets = [0, 0], sizes = [4, 14], strides = [1, 1]} : vector<4x16xf32> to vector<4x14xf32>
    %c0_8 = arith.constant 0 : index
    %c2 = arith.constant 2 : index
    %9 = vector.load %arg6[%c0_8, %c2] : memref<12x16xf32, #tpu.memory_space<vmem>>, vector<4x14xf32>
    tpu.vector_store %arg6[%c0_8, %c2], %8 {strides = array<i32>} : memref<12x16xf32, #tpu.memory_space<vmem>>, vector<4x14xf32>,
    %c0_9 = arith.constant 0 : index
    %c0_10 = arith.constant 0 : index
    %c1 = arith.constant 1 : index
    %10 = vector.load %arg7[%c0_9, %c0_10, %c1] : memref<1x4x2xf32, #tpu.memory_space<vmem>>, vector<1x4x1xf32>
    %11 = vector.shape_cast %10 : vector<1x4x1xf32> to vector<4x1xf32>
    %c4 = arith.constant 4 : index
    %c0_11 = arith.constant 0 : index
    %12 = vector.load %arg6[%c4, %c0_11] : memref<12x16xf32, #tpu.memory_space<vmem>>, vector<4x1xf32>
    tpu.vector_store %arg6[%c4, %c0_11], %11 {strides = array<i32>} : memref<12x16xf32, #tpu.memory_space<vmem>>, vector<4x1xf32>,
    %13 = vector.extract_strided_slice %4 {offsets = [0, 0], sizes = [4, 15], strides = [1, 1]} : vector<4x16xf32> to vector<4x15xf32>
    %c4_12 = arith.constant 4 : index
    %c1_13 = arith.constant 1 : index
    %14 = vector.load %arg6[%c4_12, %c1_13] : memref<12x16xf32, #tpu.memory_space<vmem>>, vector<4x15xf32>
    tpu.vector_store %arg6[%c4_12, %c1_13], %13 {strides = array<i32>} : memref<12x16xf32, #tpu.memory_space<vmem>>, vector<4x15xf32>,
    %c8 = arith.constant 8 : index
    %c0_14 = arith.constant 0 : index
    %15 = vector.load %arg6[%c8, %c0_14] : memref<12x16xf32, #tpu.memory_space<vmem>>, vector<4x16xf32>
    tpu.vector_store %arg6[%c8, %c0_14], %4 {strides = array<i32>} : memref<12x16xf32, #tpu.memory_space<vmem>>, vector<4x16xf32>,
    %c0_15 = arith.constant 0 : index
    %c0_16 = arith.constant 0 : index
    %16 = vector.load %arg3[%c0_15, %c0_16] : memref<6x12xf32, #tpu.memory_space<vmem>>, vector<6x12xf32>
    %c0_17 = arith.constant 0 : index
    %c0_18 = arith.constant 0 : index
    %17 = vector.load %arg6[%c0_17, %c0_18] : memref<12x16xf32, #tpu.memory_space<vmem>>, vector<12x16xf32>
    %cst = arith.constant dense<0.000000e+00> : vector<6x16xf32>
    %18 = tpu.matmul %16, %17, %cst {dimension_numbers = #tpu.dot_dimension_numbers<[1], [0], [0], [1], [0, 0, 1, 1], [], []>} : vector<6x12xf32>, vector<12x16xf32>, vector<6x16xf32> -> vector<6x16xf32>
    %c0_19 = arith.constant 0 : index
    %c0_20 = arith.constant 0 : index
    %19 = vector.load %arg4[%c0_19, %c0_20] : memref<6x1xf32, #tpu.memory_space<vmem>>, vector<6x1xf32>
    %20 = vector.broadcast %19 : vector<6x1xf32> to vector<6x16xf32>
    %21 = arith.addf %18, %20 : vector<6x16xf32>
    %c0_21 = arith.constant 0 : index
    %c0_22 = arith.constant 0 : index
    %c0_23 = arith.constant 0 : index
    %22 = vector.load %arg5[%c0_21, %c0_22, %c0_23] : memref<1x6x16xf32, #tpu.memory_space<vmem>>, vector<1x6x16xf32>
    %23 = vector.shape_cast %22 : vector<1x6x16xf32> to vector<6x16xf32>
    %24 = vector.shape_cast %21 : vector<6x16xf32> to vector<1x6x16xf32>
    tpu.vector_store %arg5[%c0_21, %c0_22, %c0_23], %24 {strides = array<i32>} : memref<1x6x16xf32, #tpu.memory_space<vmem>>, vector<1x6x16xf32>,
    return
  }
  func.func @transform_0(%arg0: i32, %arg1: i32) -> (i32, i32, i32) {
    %c0_i32 = arith.constant 0 : i32
    %c0_i32_0 = arith.constant 0 : i32
    return %arg0, %c0_i32, %arg1 : i32, i32, i32
  }
  func.func @transform_1(%arg0: i32, %arg1: i32) -> (i32, i32) {
    %c0_i32 = arith.constant 0 : i32
    %c0_i32_0 = arith.constant 0 : i32
    %c0_i32_1 = arith.constant 0 : i32
    return %c0_i32, %c0_i32_0 : i32, i32
  }
  func.func @transform_2(%arg0: i32, %arg1: i32) -> (i32, i32) {
    %c0_i32 = arith.constant 0 : i32
    %c0_i32_0 = arith.constant 0 : i32
    %c0_i32_1 = arith.constant 0 : i32
    return %c0_i32, %c0_i32_0 : i32, i32
  }
  func.func @transform_3(%arg0: i32, %arg1: i32) -> (i32, i32, i32) {
    %c0_i32 = arith.constant 0 : i32
    %c0_i32_0 = arith.constant 0 : i32
    return %arg0, %c0_i32, %arg1 : i32, i32, i32
  }
}

</mosaic_0001>

<bundles_post_ra>
// kernel: tpu_custom_call.1
= control target key start
LH: loop header
LB: loop body
LE: loop exit
PB: predicated region body
PF: predicated region fallthrough
CT: control target
= control target key end

     0   :  { %8 = vsyncpa [#allocation5], 0  ;;  %s563_s12 = smov 0   ;;  %s565_s13 = smov 0   ;;  %s631_s0 = inlined_call_operand.vmem [shape: f32[2,4,16], index: 0, kind: input, shape index: {}]   ;;  %s632_s1 = inlined_call_operand.hbm [shape: f32[6,12], index: 1, kind: input, shape index: {}]   ;;  %s633_s2 = inlined_call_operand.vmem [shape: f32[6,1], index: 2, kind: input, shape index: {}]   ;;  %s634_s3 = inlined_call_operand.vmem [shape: f32[2,6,16], index: 3, kind: output, shape index: {}]  }
   0x1   :  { %s567_s14 = smov 0  }
   0x2 LB: > { %s416_s15 = sadd.s32 4294967295, %s534_s14   ;;  %s26_s16 = sadd.s32 1, %s530_s13  ;;  %s534_s14 = sphi %s567_s14, %s14_s14   ;;  %s530_s13 = sphi %s565_s13, %s638_s13   ;;  %s526_s12 = sphi %s563_s12, %s637_s12  }
   0x3   : > { %p28_p0 = scmp.ge.s32.totalorder %s26_s16, 2  ;;  %p418_p1 = scmp.ge.s32.totalorder %s534_s14, 1 }
   0x4   : > { %p129_p2 = scmp.lt.s32.totalorder %s534_s14, 3  ;;  %p588_p4 = scmp.eq.s32.totalorder %s416_s15, 0 }
   0x5   : > { %s640_s16 = smov (%p28_p0, %s26_s16), 0  ;;  %s536_s19 = smov [#allocation4]  }
   0x6   : > { %p584_p3 = pnand %p418_p1, %p129_p2  ;;  %s142_s20 = sshll.u32 %s536_s19, 4  ;;  %s143_s20 = int_to_ptr.vmem [resolvable:$true] %s142_s20 }
   0x7   : > { %s493_s21 = scalar_lea.vmem %s143_s20, 128  ;;  %p501_p11 = scmp.lt.s32.totalorder %s143_s20, %s143_s20 }
   0x8   : > { %p443_p5 = pneg %p584_p3  ;;  %p494_p8 = scmp.ne.s32.totalorder %s143_s20, %s493_s21 }
   0x9   : > { %p502_p12 = scmp.lt.s32.totalorder %s493_s21, %s493_s21 }
   0xa   : > { %p444_p6 = pnand %p588_p4, %p443_p5 }
   0xb   : > { %p503_p13 = por %p502_p12, %p501_p11 }
   0xc   : > { %p484_p7 = pneg %p444_p6 }
   0xe   : > { %p496_p9 = pnand %p494_p8, %p484_p7 }
  0x10   : > { %p497_p10 = pneg %p496_p9 }
  0x12   : > { %p504_p0 = pnand %p503_p13, %p497_p10 }
  0x14   : > { %507 = shalt.err (!%p504_p0)
}
  0x15   : > { %446 = dma.hbm_to_vmem [thread:$0]  (!%p444_p6), %s632_s1, 128, %s143_s20, [#allocation5]  }
  0x16   : > { %168 = sbr.rel (%p584_p3) target bundleno = 361 (0x169), region = 32 }
  0x1b   : > { %521 = dma.done.wait (%p588_p4), [#allocation5], 128  }
  0x1c   : > { %523 = vsyncadd (%p588_p4), [#allocation5], 4294967168  ;;  %vm214_vm0 = vcmask 11264   ;;  %p196_p1 = scmp.lt.s32.totalorder %s526_s12, 1  ;;  %v537_v0 = vmov 0.0   ;;  %vm238_vm1 = vcmask 125952  }
  0x1d   : > { %215 = vst.msk [vmem:[#allocation3] sm:$0xf] %vm214_vm0, %v537_v0  ;;  %432 = vmatprep.subr.mxu0 %v537_v0  ;;  %s538_s28 = smov 1   ;;  %vm539_vm2 = vmmov 0   ;;  %s540_s29 = smov 127   ;;  %v541_v5 = vmov 0  }
  0x1e   : > { %s642_s12 = smov (!%p196_p1, %s526_s12), 1  ;;  %436 = vmatprep.mubr.msk.f32.mxu0 %vm539_vm2, %v537_v0  ;;  %v243_v4 = vld [vmem:[%s633_s2] sm:$0x3f]  ;;  %480 = vset.pattern.permute.xlu1 %v541_v5  ;;  %s542_s5 = smov 2   ;;  %vm253_vm3 = vcmask 1043456   ;;  %vm231_vm4 = vcmask 3072  }
  0x1f   : > { %s423_s24 = sshll.u32 %s642_s12, 2  ;;  %481 = vset.pattern.permute.xlu0 %v541_v5  ;;  %vm236_vm5 = vcmask 125960   ;;  %vm224_vm6 = vcmask 125968   ;;  %v240_v10 = vld [vmem:[#allocation4] sm:$0x3f]  ;;  %vm249_vm7 = vcmask 97280  }
  0x20   : > { %s202_s27 = scalar_lea.vmem %s631_s0, %s423_s24  ;;  %s424_s6 = sshll.u32 %s642_s12, 3  ;;  %vm327_vm8 = vcmask 128000  }
  0x21   : > { %v216_v1 = vld [vmem:[%s202_s27] sm:$0xf]  ;;  %s209_s9 = scalar_lea.vmem %s634_s3, %s424_s6 }
  0x22   : > { %233 = vrot.lane.b32.xlu1 %v216_v1, %s538_s28  ;;  %239 = vst.msk [vmem:[#allocation2 + $0x8] sm:$0xf] %vm238_vm1, %v216_v1 }
  0x24   : > { %v226_v2 = vld [vmem:[#allocation3] sm:$0xf] }
  0x25   : > { %v217_v3 = vld [vmem:[#allocation3] sm:$0xf]  ;;  %228 = vrot.lane.b32.xlu0 %v226_v2, %s540_s29 }
  0x26   : > { %219 = vst.msk [vmem:[#allocation2] sm:$0xf] %vm214_vm0, %v217_v3  ;;  %246 = vperm.xlu1 %480, %v243_v4  }
  0x29   : > { %221 = vrot.lane.b32.xlu0 %v216_v1, %s542_s5  ;;  %v242_v6 = vld [vmem:[#allocation2 + $0x8] sm:$0xf] }
  0x2a   : > { %433 = vmatpush3.msk.msra.mxu0 %vm253_vm3, %v242_v6 }
  0x2b   : > { %434 = vmatprep.subr.mxu0 %v537_v0 }
  0x94   : > { %v234_v7 = vpop.permute.xlu1 %233 }
  0x97   : > { %v229_v8 = vpop.permute.xlu0 %228 }
  0x98   : > { %232 = vst.msk [vmem:[#allocation2 + $0x4] sm:$0xf] %vm231_vm4, %v229_v8 }
  0x99   : > { %237 = vst.msk [vmem:[#allocation2 + $0x4] sm:$0xf] %vm236_vm5, %v234_v7 }
  0x9b   : > { %v222_v9 = vpop.permute.xlu0 %221 }
  0x9c   : > { %225 = vst.msk [vmem:[#allocation2] sm:$0xf] %vm224_vm6, %v222_v9 }
  0xa1   : > { %v247_v12 = vpop.permute.xlu1 %246 }
  0xa3   : > { %v241_v11 = vld [vmem:[#allocation2] sm:$0xff] }
  0xa4   : > { %435 = vmatpush3.msra.mxu0 %v241_v11 }
  0xa5   : > { %437 = vmatmul.mubr.msk.f32.vlgmr.msra.gmra.mxu0 %vm249_vm7, %v240_v10 }
 0x165   : > { %v323_v13 = vpop.f32.mrf.mxu0 }
 0x166   : > { %v324_v14 = vadd.f32 %v323_v13, %v247_v12 }
 0x167   : > { %v438_v15 = vpop.f32.mrf.mxu0 }
 0x168   : > { %328 = vst.msk [vmem:[%s209_s9] sm:$0x3f] %vm327_vm8, %v324_v14 }
 0x169 PF: > { %s14_s14 = sadd.s32 1, %s534_s14   ;;  %s637_s12 = smov %s530_s13 }
 0x16a   : > { %p11_p2 = scmp.ge.s32.totalorder %s14_s14, 4   ;;  %s638_s13 = smov %s640_s16 }
 0x16c   :  { %13 = sbr.rel (!%p11_p2) target bundleno = 2 (0x2), region = 71 }
 0x171   :  { %354 = vsyncpa [#allocation5], 1 }
 0x172   :  { %356 = vsyncpa [#allocation5 + $0x1], 1 }

</bundles_post_ra>
